<compile_context>
chip_gen: v7x
topology: tpu7x:2x2x1
jax: 0.10.0
libtpu: 0.0.40
codegen_flags: <defaults>
</compile_context>

<pallas_src>
import math
import functools

import jax
import jax.numpy as jnp
from jax.experimental import pallas as pl
from jax.experimental.pallas import tpu as pltpu


def _round_up(v, m):
    return (v + m - 1) // m * m


def _pad2d(a, rows, cols):
    r, c = a.shape
    if r == rows and c == cols:
        return a
    return jnp.pad(a, ((0, rows - r), (0, cols - c)))


def _matmul_kernel(a_ref, b_ref, o_ref, acc_ref):
    @pl.when(pl.program_id(2) == 0)
    def _():
        acc_ref[...] = jnp.zeros_like(acc_ref)

    acc_ref[...] += jnp.dot(
        a_ref[...], b_ref[...], preferred_element_type=jnp.float32
    )

    @pl.when(pl.program_id(2) == pl.num_programs(2) - 1)
    def _():
        o_ref[...] = acc_ref[...].astype(o_ref.dtype)


def _matmul_bias_kernel(a_ref, b_ref, bias_ref, o_ref, acc_ref):
    @pl.when(pl.program_id(2) == 0)
    def _():
        acc_ref[...] = jnp.zeros_like(acc_ref)

    acc_ref[...] += jnp.dot(
        a_ref[...], b_ref[...], preferred_element_type=jnp.float32
    )

    @pl.when(pl.program_id(2) == pl.num_programs(2) - 1)
    def _():
        # bias_ref is (1, tn) -> broadcast over tile rows in the epilogue.
        o_ref[...] = (acc_ref[...] + bias_ref[...]).astype(o_ref.dtype)


def _tiled_matmul(a, b, bias=None, *, tm=256, tn=256, tk=512, out_dtype=None):
    """C = a @ b (+ bias), MXU-tiled with f32 accumulation in VMEM scratch."""
    M, K = a.shape
    K2, N = b.shape
    assert K == K2, (a.shape, b.shape)
    out_dtype = a.dtype if out_dtype is None else out_dtype

    # Clamp tiles for small problems but keep every tile a multiple of 128
    # (lane-dense stores, full MXU width), then pad dims to tile multiples.
    tm = min(tm, _round_up(M, 128))
    tn = min(tn, _round_up(N, 128))
    tk = min(tk, _round_up(K, 128))
    Mp, Np, Kp = _round_up(M, tm), _round_up(N, tn), _round_up(K, tk)

    a_p = _pad2d(a, Mp, Kp)
    b_p = _pad2d(b, Kp, Np)

    in_specs = [
        pl.BlockSpec((tm, tk), lambda i, j, k: (i, k)),
        pl.BlockSpec((tk, tn), lambda i, j, k: (k, j)),
    ]
    operands = [a_p, b_p]
    if bias is not None:
        bias_p = jnp.pad(bias, (0, Np - bias.shape[0])).reshape(1, Np)
        in_specs.append(pl.BlockSpec((1, tn), lambda i, j, k: (0, j)))
        operands.append(bias_p)
        kernel = _matmul_bias_kernel
    else:
        kernel = _matmul_kernel

    grid = (Mp // tm, Np // tn, Kp // tk)

    out_p = pl.pallas_call(
        kernel,
        out_shape=jax.ShapeDtypeStruct((Mp, Np), out_dtype),
        grid_spec=pltpu.PrefetchScalarGridSpec(
            num_scalar_prefetch=0,
            grid=grid,
            in_specs=in_specs,
            out_specs=pl.BlockSpec((tm, tn), lambda i, j, k: (i, j)),
            scratch_shapes=[pltpu.VMEM((tm, tn), jnp.float32)],
        ),
        compiler_params=pltpu.CompilerParams(
            # K (reduction) axis last and "arbitrary"; row/col axes "parallel"
            # so v7x's two TensorCores can split the work.
            dimension_semantics=("parallel", "parallel", "arbitrary"),
            vmem_limit_bytes=48 * 1024 * 1024,
        ),
        cost_estimate=pl.CostEstimate(
            flops=2 * Mp * Np * Kp,
            transcendentals=0,
            bytes_accessed=4 * (Mp * Kp + Kp * Np + Mp * Np),
        ),
    )(*operands)

    if (Mp, Np) == (M, N):
        return out_p
    return out_p[:M, :N]


@functools.partial(jax.jit, static_argnames=("tm", "tn", "tk"))
def hgnn_conv(x, G, weight, bias=None, *, tm=256, tn=256, tk=512):
    """Pallas implementation of HGNN_conv.forward: G @ (x @ weight + bias)."""
    N, _ = x.shape
    assert G.shape == (N, N)

    # Stage 1: xw = x @ W (+ b) — own kernel so stage 2 stays fully 'parallel'.
    xw = _tiled_matmul(x, weight, bias, tm=tm, tn=tn, tk=tk, out_dtype=x.dtype)
    # Stage 2: y = G @ xw — dominant matmul, K-tiled over nodes.
    # TODO(synk): optional bf16 cast of G/xw here would hit peak MXU throughput
    # on v6e/v7x; kept f32 to preserve the module's default fp32 accuracy.
    y = _tiled_matmul(G, xw, None, tm=tm, tn=tn, tk=tk, out_dtype=x.dtype)
    return y


def init_params(key, in_ft, out_ft, dtype=jnp.float32):
    """Deterministic re-implementation of HGNN_conv.reset_parameters."""
    stdv = 1.0 / math.sqrt(out_ft)
    kw, kb = jax.random.split(key)
    weight = jax.random.uniform(kw, (in_ft, out_ft), dtype, minval=-stdv, maxval=stdv)
    bias = jax.random.uniform(kb, (out_ft,), dtype, minval=-stdv, maxval=stdv)
    return weight, bias


if __name__ == "__main__":
    # Small, HGNN-consistent shapes: N nodes, in_ft -> out_ft features.
    N, in_ft, out_ft = 16, 32, 64

    key = jax.random.PRNGKey(0)
    k_x, k_g, k_p = jax.random.split(key, 3)

    x = jax.random.normal(k_x, (N, in_ft), jnp.float32)
    G = jax.random.normal(k_g, (N, N), jnp.float32)
    weight, bias = init_params(k_p, in_ft, out_ft)

    out = hgnn_conv(x, G, weight, bias)
    out = jax.block_until_ready(out)

    # Pure-JAX reference check (same math as the PyTorch forward).
    ref = G @ (x @ weight + bias)
    assert out.shape == (N, out_ft)
    rel_err = jnp.max(jnp.abs(out - ref)) / jnp.max(jnp.abs(ref))
    assert rel_err < 1e-2, f"mismatch vs reference, rel_err={rel_err}"

    # Bias-less path (module supports bias=None).
    out_nb = jax.block_until_ready(hgnn_conv(x, G, weight, None))
    ref_nb = G @ (x @ weight)
    rel_err_nb = jnp.max(jnp.abs(out_nb - ref_nb)) / jnp.max(jnp.abs(ref_nb))
    assert rel_err_nb < 1e-2, f"bias-less mismatch, rel_err={rel_err_nb}"

    print("KERNEL_OK")
</pallas_src>

<mosaic_0001>
module attributes {stable_mosaic.version = 11 : i64} {
  func.func @_matmul_bias_kernel(%arg0: i32, %arg1: i32, %arg2: i32, %arg3: memref<128x128xf32, #tpu.memory_space<vmem>>, %arg4: memref<128x128xf32, #tpu.memory_space<vmem>>, %arg5: memref<1x128xf32, #tpu.memory_space<vmem>>, %arg6: memref<128x128xf32, #tpu.memory_space<vmem>>, %arg7: memref<128x128xf32, #tpu.memory_space<vmem>>) attributes {dimension_semantics = [#tpu.dimension_semantics<parallel>, #tpu.dimension_semantics<parallel>, #tpu.dimension_semantics<arbitrary>], iteration_bounds = array<i64: 1, 1, 1>, scalar_prefetch = 0 : i64, scratch_operands = 1 : i64, tpu.core_type = #tpu.core_type<tc>, window_params = [{transform_indices = @transform_0, window_bounds = array<i64: 128, 128>}, {transform_indices = @transform_1, window_bounds = array<i64: 128, 128>}, {transform_indices = @transform_2, window_bounds = array<i64: 1, 128>}, {transform_indices = @transform_3, window_bounds = array<i64: 128, 128>}]} {
    %c0_i32 = arith.constant 0 : i32
    %0 = arith.cmpi eq, %arg2, %c0_i32 : i32
    %1 = arith.extui %0 : i1 to i32
    %c0_i32_0 = arith.constant 0 : i32
    %2 = arith.cmpi ne, %1, %c0_i32_0 : i32
    scf.if %2 {
      %cst_10 = arith.constant 0.000000e+00 : f32
      %12 = vector.broadcast %cst_10 : f32 to vector<128x128xf32>
      %c0_11 = arith.constant 0 : index
      %c0_12 = arith.constant 0 : index
      %13 = vector.load %arg7[%c0_11, %c0_12] : memref<128x128xf32, #tpu.memory_space<vmem>>, vector<128x128xf32>
      tpu.vector_store %arg7[%c0_11, %c0_12], %12 {strides = array<i32>} : memref<128x128xf32, #tpu.memory_space<vmem>>, vector<128x128xf32>,
    } else {
    }
    %c0 = arith.constant 0 : index
    %c0_1 = arith.constant 0 : index
    %3 = vector.load %arg7[%c0, %c0_1] : memref<128x128xf32, #tpu.memory_space<vmem>>, vector<128x128xf32>
    %c0_2 = arith.constant 0 : index
    %c0_3 = arith.constant 0 : index
    %4 = vector.load %arg3[%c0_2, %c0_3] : memref<128x128xf32, #tpu.memory_space<vmem>>, vector<128x128xf32>
    %c0_4 = arith.constant 0 : index
    %c0_5 = arith.constant 0 : index
    %5 = vector.load %arg4[%c0_4, %c0_5] : memref<128x128xf32, #tpu.memory_space<vmem>>, vector<128x128xf32>
    %cst = arith.constant dense<0.000000e+00> : vector<128x128xf32>
    %6 = tpu.matmul %4, %5, %cst {dimension_numbers = #tpu.dot_dimension_numbers<[1], [0], [0], [1], [0, 0, 1, 1], [], []>} : vector<128x128xf32>, vector<128x128xf32>, vector<128x128xf32> -> vector<128x128xf32>
    %7 = arith.addf %3, %6 : vector<128x128xf32>
    %c0_6 = arith.constant 0 : index
    %c0_7 = arith.constant 0 : index
    %8 = vector.load %arg7[%c0_6, %c0_7] : memref<128x128xf32, #tpu.memory_space<vmem>>, vector<128x128xf32>
    tpu.vector_store %arg7[%c0_6, %c0_7], %7 {strides = array<i32>} : memref<128x128xf32, #tpu.memory_space<vmem>>, vector<128x128xf32>,
    %c0_i32_8 = arith.constant 0 : i32
    %9 = arith.cmpi eq, %arg2, %c0_i32_8 : i32
    %10 = arith.extui %9 : i1 to i32
    %c0_i32_9 = arith.constant 0 : i32
    %11 = arith.cmpi ne, %10, %c0_i32_9 : i32
    scf.if %11 {
      %c0_10 = arith.constant 0 : index
      %c0_11 = arith.constant 0 : index
      %12 = vector.load %arg7[%c0_10, %c0_11] : memref<128x128xf32, #tpu.memory_space<vmem>>, vector<128x128xf32>
      %c0_12 = arith.constant 0 : index
      %c0_13 = arith.constant 0 : index
      %13 = vector.load %arg5[%c0_12, %c0_13] : memref<1x128xf32, #tpu.memory_space<vmem>>, vector<1x128xf32>
      %14 = vector.broadcast %13 : vector<1x128xf32> to vector<128x128xf32>
      %15 = arith.addf %12, %14 : vector<128x128xf32>
      %c0_14 = arith.constant 0 : index
      %c0_15 = arith.constant 0 : index
      %16 = vector.load %arg6[%c0_14, %c0_15] : memref<128x128xf32, #tpu.memory_space<vmem>>, vector<128x128xf32>
      tpu.vector_store %arg6[%c0_14, %c0_15], %15 {strides = array<i32>} : memref<128x128xf32, #tpu.memory_space<vmem>>, vector<128x128xf32>,
    } else {
    }
    return
  }
  func.func @transform_0(%arg0: i32, %arg1: i32, %arg2: i32) -> (i32, i32) {
    %c0_i32 = arith.constant 0 : i32
    return %arg0, %arg2 : i32, i32
  }
  func.func @transform_1(%arg0: i32, %arg1: i32, %arg2: i32) -> (i32, i32) {
    %c0_i32 = arith.constant 0 : i32
    return %arg2, %arg1 : i32, i32
  }
  func.func @transform_2(%arg0: i32, %arg1: i32, %arg2: i32) -> (i32, i32) {
    %c0_i32 = arith.constant 0 : i32
    %c0_i32_0 = arith.constant 0 : i32
    return %c0_i32, %arg1 : i32, i32
  }
  func.func @transform_3(%arg0: i32, %arg1: i32, %arg2: i32) -> (i32, i32) {
    %c0_i32 = arith.constant 0 : i32
    return %arg0, %arg1 : i32, i32
  }
}

module attributes {stable_mosaic.version = 11 : i64} {
  func.func @_matmul_kernel(%arg0: i32, %arg1: i32, %arg2: i32, %arg3: memref<128x128xf32, #tpu.memory_space<vmem>>, %arg4: memref<128x128xf32, #tpu.memory_space<vmem>>, %arg5: memref<128x128xf32, #tpu.memory_space<vmem>>, %arg6: memref<128x128xf32, #tpu.memory_space<vmem>>) attributes {dimension_semantics = [#tpu.dimension_semantics<parallel>, #tpu.dimension_semantics<parallel>, #tpu.dimension_semantics<arbitrary>], iteration_bounds = array<i64: 1, 1, 1>, scalar_prefetch = 0 : i64, scratch_operands = 1 : i64, tpu.core_type = #tpu.core_type<tc>, window_params = [{transform_indices = @transform_0, window_bounds = array<i64: 128, 128>}, {transform_indices = @transform_1, window_bounds = array<i64: 128, 128>}, {transform_indices = @transform_2, window_bounds = array<i64: 128, 128>}]} {
    %c0_i32 = arith.constant 0 : i32
    %0 = arith.cmpi eq, %arg2, %c0_i32 : i32
    %1 = arith.extui %0 : i1 to i32
    %c0_i32_0 = arith.constant 0 : i32
    %2 = arith.cmpi ne, %1, %c0_i32_0 : i32
    scf.if %2 {
      %cst_10 = arith.constant 0.000000e+00 : f32
      %12 = vector.broadcast %cst_10 : f32 to vector<128x128xf32>
      %c0_11 = arith.constant 0 : index
      %c0_12 = arith.constant 0 : index
      %13 = vector.load %arg6[%c0_11, %c0_12] : memref<128x128xf32, #tpu.memory_space<vmem>>, vector<128x128xf32>
      tpu.vector_store %arg6[%c0_11, %c0_12], %12 {strides = array<i32>} : memref<128x128xf32, #tpu.memory_space<vmem>>, vector<128x128xf32>,
    } else {
    }
    %c0 = arith.constant 0 : index
    %c0_1 = arith.constant 0 : index
    %3 = vector.load %arg6[%c0, %c0_1] : memref<128x128xf32, #tpu.memory_space<vmem>>, vector<128x128xf32>
    %c0_2 = arith.constant 0 : index
    %c0_3 = arith.constant 0 : index
    %4 = vector.load %arg3[%c0_2, %c0_3] : memref<128x128xf32, #tpu.memory_space<vmem>>, vector<128x128xf32>
    %c0_4 = arith.constant 0 : index
    %c0_5 = arith.constant 0 : index
    %5 = vector.load %arg4[%c0_4, %c0_5] : memref<128x128xf32, #tpu.memory_space<vmem>>, vector<128x128xf32>
    %cst = arith.constant dense<0.000000e+00> : vector<128x128xf32>
    %6 = tpu.matmul %4, %5, %cst {dimension_numbers = #tpu.dot_dimension_numbers<[1], [0], [0], [1], [0, 0, 1, 1], [], []>} : vector<128x128xf32>, vector<128x128xf32>, vector<128x128xf32> -> vector<128x128xf32>
    %7 = arith.addf %3, %6 : vector<128x128xf32>
    %c0_6 = arith.constant 0 : index
    %c0_7 = arith.constant 0 : index
    %8 = vector.load %arg6[%c0_6, %c0_7] : memref<128x128xf32, #tpu.memory_space<vmem>>, vector<128x128xf32>
    tpu.vector_store %arg6[%c0_6, %c0_7], %7 {strides = array<i32>} : memref<128x128xf32, #tpu.memory_space<vmem>>, vector<128x128xf32>,
    %c0_i32_8 = arith.constant 0 : i32
    %9 = arith.cmpi eq, %arg2, %c0_i32_8 : i32
    %10 = arith.extui %9 : i1 to i32
    %c0_i32_9 = arith.constant 0 : i32
    %11 = arith.cmpi ne, %10, %c0_i32_9 : i32
    scf.if %11 {
      %c0_10 = arith.constant 0 : index
      %c0_11 = arith.constant 0 : index
      %12 = vector.load %arg6[%c0_10, %c0_11] : memref<128x128xf32, #tpu.memory_space<vmem>>, vector<128x128xf32>
      %c0_12 = arith.constant 0 : index
      %c0_13 = arith.constant 0 : index
      %13 = vector.load %arg5[%c0_12, %c0_13] : memref<128x128xf32, #tpu.memory_space<vmem>>, vector<128x128xf32>
      tpu.vector_store %arg5[%c0_12, %c0_13], %12 {strides = array<i32>} : memref<128x128xf32, #tpu.memory_space<vmem>>, vector<128x128xf32>,
    } else {
    }
    return
  }
  func.func @transform_0(%arg0: i32, %arg1: i32, %arg2: i32) -> (i32, i32) {
    %c0_i32 = arith.constant 0 : i32
    return %arg0, %arg2 : i32, i32
  }
  func.func @transform_1(%arg0: i32, %arg1: i32, %arg2: i32) -> (i32, i32) {
    %c0_i32 = arith.constant 0 : i32
    return %arg2, %arg1 : i32, i32
  }
  func.func @transform_2(%arg0: i32, %arg1: i32, %arg2: i32) -> (i32, i32) {
    %c0_i32 = arith.constant 0 : i32
    return %arg0, %arg1 : i32, i32
  }
}

</mosaic_0001>

<bundles_post_ra>
// kernel: hgnn_conv.3
= control target key start
LH: loop header
LB: loop body
LE: loop exit
PB: predicated region body
PF: predicated region fallthrough
CT: control target
= control target key end

     0   :  { %s590_s1 = inlined_call_operand.vmem [shape: f32[128,128], index: 1, kind: input, shape index: {}]   ;;  %s591_s0 = inlined_call_operand.vmem [shape: f32[128,128], index: 0, kind: input, shape index: {}]   ;;  %s592_s2 = inlined_call_operand.vmem [shape: f32[128,128], index: 2, kind: output, shape index: {}]  }
   0x1   :  { %v63_v0 = vld [vmem:[%s590_s1] sm:$0xff]  ;;  %v64_v1 = vld [vmem:[%s590_s1 + $0x8] sm:$0xff]  ;;  %v65_v2 = vld [vmem:[%s590_s1 + $0x10] sm:$0xff] }
   0x2   :  { %v383_v3 = vpack.c.bf16 %v64_v1, %v63_v0  ;;  %v66_v4 = vld [vmem:[%s590_s1 + $0x18] sm:$0xff]  ;;  %v67_v6 = vld [vmem:[%s590_s1 + $0x20] sm:$0xff]  ;;  %v68_v7 = vld [vmem:[%s590_s1 + $0x28] sm:$0xff] }
   0x3   :  { %v387_v5 = vpack.c.bf16 %v66_v4, %v65_v2  ;;  %v391_v8 = vpack.c.bf16 %v68_v7, %v67_v6  ;;  %v47_v9 = vld [vmem:[%s591_s0] sm:$0xff]  ;;  %v69_v11 = vld [vmem:[%s590_s1 + $0x30] sm:$0xff]  ;;  %v70_v12 = vld [vmem:[%s590_s1 + $0x38] sm:$0xff] }
   0x4   :  { %384 = vmatprep.subr.bf16.mxu0 %v383_v3  ;;  %415 = vmatprep.subr.bf16.mxu1 %v383_v3  ;;  %v55_v10 = vld [vmem:[%s591_s0 + $0x40] sm:$0xff]  ;;  %v395_v13 = vpack.c.bf16 %v70_v12, %v69_v11  ;;  %v72_v15 = vld [vmem:[%s590_s1 + $0x48] sm:$0xff]  ;;  %v73_v17 = vld [vmem:[%s590_s1 + $0x50] sm:$0xff] }
   0x5   :  { %386 = vmatpush3.bf16.msra.mxu0 %v383_v3  ;;  %423 = vmatpush3.bf16.msra.mxu1 %v383_v3  ;;  %v71_v14 = vld [vmem:[%s590_s1 + $0x40] sm:$0xff]  ;;  %v74_v18 = vld [vmem:[%s590_s1 + $0x58] sm:$0xff]  ;;  %v76_v21 = vld [vmem:[%s590_s1 + $0x68] sm:$0xff] }
   0x6   :  { %388 = vmatprep.subr.bf16.mxu0 %v387_v5  ;;  %416 = vmatprep.subr.bf16.mxu1 %v387_v5  ;;  %v399_v16 = vpack.c.bf16 %v72_v15, %v71_v14  ;;  %v403_v19 = vpack.c.bf16 %v74_v18, %v73_v17  ;;  %v75_v20 = vld [vmem:[%s590_s1 + $0x60] sm:$0xff]  ;;  %v77_v23 = vld [vmem:[%s590_s1 + $0x70] sm:$0xff]  ;;  %v78_v24 = vld [vmem:[%s590_s1 + $0x78] sm:$0xff] }
   0x7   :  { %359 = vmatprep.mubr.f32.mxu0 %v47_v9  ;;  %371 = vmatprep.mubr.f32.mxu1 %v55_v10  ;;  %v407_v22 = vpack.c.bf16 %v76_v21, %v75_v20  ;;  %v411_v25 = vpack.c.bf16 %v78_v24, %v77_v23  ;;  %v48_v26 = vld [vmem:[%s591_s0 + $0x8] sm:$0xff]  ;;  %v49_v28 = vld [vmem:[%s591_s0 + $0x10] sm:$0xff]  ;;  %v50_v30 = vld [vmem:[%s591_s0 + $0x18] sm:$0xff] }
   0x8   :  { %v56_v27 = vld [vmem:[%s591_s0 + $0x48] sm:$0xff]  ;;  %v57_v29 = vld [vmem:[%s591_s0 + $0x50] sm:$0xff]  ;;  %v58_v31 = vld [vmem:[%s591_s0 + $0x58] sm:$0xff] }
   0x9   :  { %390 = vmatpush3.bf16.msra.mxu0 %v387_v5  ;;  %424 = vmatpush3.bf16.msra.mxu1 %v387_v5  ;;  %v51_v32 = vld [vmem:[%s591_s0 + $0x20] sm:$0xff]  ;;  %v52_v34 = vld [vmem:[%s591_s0 + $0x28] sm:$0xff]  ;;  %v53_v36 = vld [vmem:[%s591_s0 + $0x30] sm:$0xff] }
   0xa   :  { %392 = vmatprep.subr.bf16.mxu0 %v391_v8  ;;  %417 = vmatprep.subr.bf16.mxu1 %v391_v8  ;;  %v59_v33 = vld [vmem:[%s591_s0 + $0x60] sm:$0xff]  ;;  %v60_v35 = vld [vmem:[%s591_s0 + $0x68] sm:$0xff]  ;;  %v61_v37 = vld [vmem:[%s591_s0 + $0x70] sm:$0xff] }
   0xb   :  { %v54_v38 = vld [vmem:[%s591_s0 + $0x38] sm:$0xff] }
   0xc   :  { %v62_v39 = vld [vmem:[%s591_s0 + $0x78] sm:$0xff] }
   0xd   :  { %394 = vmatpush3.bf16.msra.mxu0 %v391_v8  ;;  %425 = vmatpush3.bf16.msra.mxu1 %v391_v8 }
   0xe   :  { %396 = vmatprep.subr.bf16.mxu0 %v395_v13  ;;  %418 = vmatprep.subr.bf16.mxu1 %v395_v13 }
  0x11   :  { %398 = vmatpush3.bf16.msra.mxu0 %v395_v13  ;;  %426 = vmatpush3.bf16.msra.mxu1 %v395_v13 }
  0x12   :  { %400 = vmatprep.subr.bf16.mxu0 %v399_v16  ;;  %419 = vmatprep.subr.bf16.mxu1 %v399_v16 }
  0x15   :  { %402 = vmatpush3.bf16.msra.mxu0 %v399_v16  ;;  %427 = vmatpush3.bf16.msra.mxu1 %v399_v16 }
  0x16   :  { %404 = vmatprep.subr.bf16.mxu0 %v403_v19  ;;  %420 = vmatprep.subr.bf16.mxu1 %v403_v19 }
  0x19   :  { %406 = vmatpush3.bf16.msra.mxu0 %v403_v19  ;;  %428 = vmatpush3.bf16.msra.mxu1 %v403_v19 }
  0x1a   :  { %408 = vmatprep.subr.bf16.mxu0 %v407_v22  ;;  %421 = vmatprep.subr.bf16.mxu1 %v407_v22 }
  0x1d   :  { %410 = vmatpush3.bf16.msra.mxu0 %v407_v22  ;;  %429 = vmatpush3.bf16.msra.mxu1 %v407_v22 }
  0x1e   :  { %412 = vmatprep.subr.bf16.mxu0 %v411_v25  ;;  %422 = vmatprep.subr.bf16.mxu1 %v411_v25 }
  0x21   :  { %414 = vmatpush3.bf16.msra.mxu0 %v411_v25  ;;  %430 = vmatpush3.bf16.msra.mxu1 %v411_v25 }
  0x24   :  { %360 = vmatmul.mubr.f32.vlgmr.msra.gmra.mrb[0].mxu0 %v48_v26  ;;  %372 = vmatmul.mubr.f32.vlgmr.msra.gmra.mrb[0].mxu1 %v56_v27 }
  0x25   :  { %362 = vmatprep.mubr.f32.mxu0 %v49_v28  ;;  %374 = vmatprep.mubr.f32.mxu1 %v57_v29 }
  0x28   :  { %363 = vmatmul.mubr.f32.gmra.mrb[2].mxu0 %v50_v30  ;;  %375 = vmatmul.mubr.f32.gmra.mrb[2].mxu1 %v58_v31 }
  0x29   :  { %365 = vmatprep.mubr.f32.mxu0 %v51_v32  ;;  %377 = vmatprep.mubr.f32.mxu1 %v59_v33 }
  0x2c   :  { %366 = vmatmul.mubr.f32.gmra.mrb[4].mxu0 %v52_v34  ;;  %378 = vmatmul.mubr.f32.gmra.mrb[4].mxu1 %v60_v35 }
  0x2d   :  { %368 = vmatprep.mubr.f32.mxu0 %v53_v36  ;;  %380 = vmatprep.mubr.f32.mxu1 %v61_v37 }
  0x30   :  { %369 = vmatmul.mubr.f32.gmra.mrb[6].mxu0 %v54_v38  ;;  %381 = vmatmul.mubr.f32.gmra.mrb[6].mxu1 %v62_v39 }
  0xf7   :  { %v361_v40 = vpop.f32.mrb[0].mxu0  ;;  %v373_v41 = vpop.f32.mrb[0].mxu1 }
  0xf8   :  { %276 = vst [vmem:[%s592_s2 + $0x8] sm:$0xff] %v361_v40  ;;  %284 = vst [vmem:[%s592_s2 + $0x48] sm:$0xff] %v373_v41  ;;  %v145_v42 = vpop.f32.mrb[1].mxu0  ;;  %v185_v43 = vpop.f32.mrb[1].mxu1 }
  0xf9   :  { %275 = vst [vmem:[%s592_s2] sm:$0xff] %v145_v42  ;;  %283 = vst [vmem:[%s592_s2 + $0x40] sm:$0xff] %v185_v43 }
  0xfb   :  { %v364_v44 = vpop.f32.mrb[2].mxu0  ;;  %v376_v45 = vpop.f32.mrb[2].mxu1 }
  0xfc   :  { %278 = vst [vmem:[%s592_s2 + $0x18] sm:$0xff] %v364_v44  ;;  %286 = vst [vmem:[%s592_s2 + $0x58] sm:$0xff] %v376_v45  ;;  %v155_v46 = vpop.f32.mrb[3].mxu0  ;;  %v195_v47 = vpop.f32.mrb[3].mxu1 }
  0xfd   :  { %277 = vst [vmem:[%s592_s2 + $0x10] sm:$0xff] %v155_v46  ;;  %285 = vst [vmem:[%s592_s2 + $0x50] sm:$0xff] %v195_v47 }
  0xff   :  { %v367_v48 = vpop.f32.mrb[4].mxu0  ;;  %v379_v49 = vpop.f32.mrb[4].mxu1 }
 0x100   :  { %280 = vst [vmem:[%s592_s2 + $0x28] sm:$0xff] %v367_v48  ;;  %288 = vst [vmem:[%s592_s2 + $0x68] sm:$0xff] %v379_v49  ;;  %v165_v50 = vpop.f32.mrb[5].mxu0  ;;  %v205_v51 = vpop.f32.mrb[5].mxu1 }
 0x101   :  { %279 = vst [vmem:[%s592_s2 + $0x20] sm:$0xff] %v165_v50  ;;  %287 = vst [vmem:[%s592_s2 + $0x60] sm:$0xff] %v205_v51 }
 0x103   :  { %v370_v52 = vpop.f32.mrb[6].mxu0  ;;  %v382_v53 = vpop.f32.mrb[6].mxu1 }
 0x104   :  { %282 = vst [vmem:[%s592_s2 + $0x38] sm:$0xff] %v370_v52  ;;  %290 = vst [vmem:[%s592_s2 + $0x78] sm:$0xff] %v382_v53  ;;  %v175_v54 = vpop.f32.mrb[7].mxu0  ;;  %v215_v55 = vpop.f32.mrb[7].mxu1 }
 0x105   :  { %281 = vst [vmem:[%s592_s2 + $0x30] sm:$0xff] %v175_v54  ;;  %289 = vst [vmem:[%s592_s2 + $0x70] sm:$0xff] %v215_v55 }

// kernel: hgnn_conv.2
= control target key start
LH: loop header
LB: loop body
LE: loop exit
PB: predicated region body
PF: predicated region fallthrough
CT: control target
= control target key end

     0   :  { %s625_s1 = inlined_call_operand.vmem [shape: f32[128,128], index: 1, kind: input, shape index: {}]   ;;  %s626_s0 = inlined_call_operand.vmem [shape: f32[128,128], index: 0, kind: input, shape index: {}]   ;;  %s627_s2 = inlined_call_operand.vmem [shape: f32[1,128], index: 2, kind: input, shape index: {}]   ;;  %s628_s3 = inlined_call_operand.vmem [shape: f32[128,128], index: 3, kind: output, shape index: {}]  }
   0x1   :  { %v66_v0 = vld [vmem:[%s625_s1] sm:$0xff]  ;;  %v67_v1 = vld [vmem:[%s625_s1 + $0x8] sm:$0xff]  ;;  %v68_v2 = vld [vmem:[%s625_s1 + $0x10] sm:$0xff] }
   0x2   :  { %v410_v3 = vpack.c.bf16 %v67_v1, %v66_v0  ;;  %v69_v4 = vld [vmem:[%s625_s1 + $0x18] sm:$0xff]  ;;  %v70_v6 = vld [vmem:[%s625_s1 + $0x20] sm:$0xff]  ;;  %v71_v7 = vld [vmem:[%s625_s1 + $0x28] sm:$0xff] }
   0x3   :  { %v414_v5 = vpack.c.bf16 %v69_v4, %v68_v2  ;;  %v418_v8 = vpack.c.bf16 %v71_v7, %v70_v6  ;;  %v50_v9 = vld [vmem:[%s626_s0] sm:$0xff]  ;;  %v72_v11 = vld [vmem:[%s625_s1 + $0x30] sm:$0xff]  ;;  %v73_v12 = vld [vmem:[%s625_s1 + $0x38] sm:$0xff] }
   0x4   :  { %411 = vmatprep.subr.bf16.mxu0 %v410_v3  ;;  %442 = vmatprep.subr.bf16.mxu1 %v410_v3  ;;  %v58_v10 = vld [vmem:[%s626_s0 + $0x40] sm:$0xff]  ;;  %v422_v13 = vpack.c.bf16 %v73_v12, %v72_v11  ;;  %v75_v15 = vld [vmem:[%s625_s1 + $0x48] sm:$0xff]  ;;  %v76_v17 = vld [vmem:[%s625_s1 + $0x50] sm:$0xff] }
   0x5   :  { %413 = vmatpush3.bf16.msra.mxu0 %v410_v3  ;;  %450 = vmatpush3.bf16.msra.mxu1 %v410_v3  ;;  %v74_v14 = vld [vmem:[%s625_s1 + $0x40] sm:$0xff]  ;;  %v77_v18 = vld [vmem:[%s625_s1 + $0x58] sm:$0xff]  ;;  %v79_v21 = vld [vmem:[%s625_s1 + $0x68] sm:$0xff] }
   0x6   :  { %415 = vmatprep.subr.bf16.mxu0 %v414_v5  ;;  %443 = vmatprep.subr.bf16.mxu1 %v414_v5  ;;  %v426_v16 = vpack.c.bf16 %v75_v15, %v74_v14  ;;  %v430_v19 = vpack.c.bf16 %v77_v18, %v76_v17  ;;  %v78_v20 = vld [vmem:[%s625_s1 + $0x60] sm:$0xff]  ;;  %v80_v23 = vld [vmem:[%s625_s1 + $0x70] sm:$0xff]  ;;  %v81_v24 = vld [vmem:[%s625_s1 + $0x78] sm:$0xff] }
   0x7   :  { %386 = vmatprep.mubr.f32.mxu0 %v50_v9  ;;  %398 = vmatprep.mubr.f32.mxu1 %v58_v10  ;;  %v434_v22 = vpack.c.bf16 %v79_v21, %v78_v20  ;;  %v438_v25 = vpack.c.bf16 %v81_v24, %v80_v23  ;;  %v51_v26 = vld [vmem:[%s626_s0 + $0x8] sm:$0xff]  ;;  %v52_v28 = vld [vmem:[%s626_s0 + $0x10] sm:$0xff]  ;;  %v53_v30 = vld [vmem:[%s626_s0 + $0x18] sm:$0xff] }
   0x8   :  { %v59_v27 = vld [vmem:[%s626_s0 + $0x48] sm:$0xff]  ;;  %v60_v29 = vld [vmem:[%s626_s0 + $0x50] sm:$0xff]  ;;  %v61_v31 = vld [vmem:[%s626_s0 + $0x58] sm:$0xff] }
   0x9   :  { %417 = vmatpush3.bf16.msra.mxu0 %v414_v5  ;;  %451 = vmatpush3.bf16.msra.mxu1 %v414_v5  ;;  %v54_v32 = vld [vmem:[%s626_s0 + $0x20] sm:$0xff]  ;;  %v55_v34 = vld [vmem:[%s626_s0 + $0x28] sm:$0xff]  ;;  %v56_v36 = vld [vmem:[%s626_s0 + $0x30] sm:$0xff] }
   0xa   :  { %419 = vmatprep.subr.bf16.mxu0 %v418_v8  ;;  %444 = vmatprep.subr.bf16.mxu1 %v418_v8  ;;  %v62_v33 = vld [vmem:[%s626_s0 + $0x60] sm:$0xff]  ;;  %v63_v35 = vld [vmem:[%s626_s0 + $0x68] sm:$0xff]  ;;  %v64_v37 = vld [vmem:[%s626_s0 + $0x70] sm:$0xff] }
   0xb   :  { %v57_v38 = vld [vmem:[%s626_s0 + $0x38] sm:$0xff]  ;;  %v321_v40 = vld [vmem:[%s627_s2] ss:$0 sm:$0xff] }
   0xc   :  { %v65_v39 = vld [vmem:[%s626_s0 + $0x78] sm:$0xff] }
   0xd   :  { %421 = vmatpush3.bf16.msra.mxu0 %v418_v8  ;;  %452 = vmatpush3.bf16.msra.mxu1 %v418_v8 }
   0xe   :  { %423 = vmatprep.subr.bf16.mxu0 %v422_v13  ;;  %445 = vmatprep.subr.bf16.mxu1 %v422_v13 }
  0x11   :  { %425 = vmatpush3.bf16.msra.mxu0 %v422_v13  ;;  %453 = vmatpush3.bf16.msra.mxu1 %v422_v13 }
  0x12   :  { %427 = vmatprep.subr.bf16.mxu0 %v426_v16  ;;  %446 = vmatprep.subr.bf16.mxu1 %v426_v16 }
  0x15   :  { %429 = vmatpush3.bf16.msra.mxu0 %v426_v16  ;;  %454 = vmatpush3.bf16.msra.mxu1 %v426_v16 }
  0x16   :  { %431 = vmatprep.subr.bf16.mxu0 %v430_v19  ;;  %447 = vmatprep.subr.bf16.mxu1 %v430_v19 }
  0x19   :  { %433 = vmatpush3.bf16.msra.mxu0 %v430_v19  ;;  %455 = vmatpush3.bf16.msra.mxu1 %v430_v19 }
  0x1a   :  { %435 = vmatprep.subr.bf16.mxu0 %v434_v22  ;;  %448 = vmatprep.subr.bf16.mxu1 %v434_v22 }
  0x1d   :  { %437 = vmatpush3.bf16.msra.mxu0 %v434_v22  ;;  %456 = vmatpush3.bf16.msra.mxu1 %v434_v22 }
  0x1e   :  { %439 = vmatprep.subr.bf16.mxu0 %v438_v25  ;;  %449 = vmatprep.subr.bf16.mxu1 %v438_v25 }
  0x21   :  { %441 = vmatpush3.bf16.msra.mxu0 %v438_v25  ;;  %457 = vmatpush3.bf16.msra.mxu1 %v438_v25 }
  0x24   :  { %387 = vmatmul.mubr.f32.vlgmr.msra.gmra.mrb[0].mxu0 %v51_v26  ;;  %399 = vmatmul.mubr.f32.vlgmr.msra.gmra.mrb[0].mxu1 %v59_v27 }
  0x25   :  { %389 = vmatprep.mubr.f32.mxu0 %v52_v28  ;;  %401 = vmatprep.mubr.f32.mxu1 %v60_v29 }
  0x28   :  { %390 = vmatmul.mubr.f32.gmra.mrb[2].mxu0 %v53_v30  ;;  %402 = vmatmul.mubr.f32.gmra.mrb[2].mxu1 %v61_v31 }
  0x29   :  { %392 = vmatprep.mubr.f32.mxu0 %v54_v32  ;;  %404 = vmatprep.mubr.f32.mxu1 %v62_v33 }
  0x2c   :  { %393 = vmatmul.mubr.f32.gmra.mrb[4].mxu0 %v55_v34  ;;  %405 = vmatmul.mubr.f32.gmra.mrb[4].mxu1 %v63_v35 }
  0x2d   :  { %395 = vmatprep.mubr.f32.mxu0 %v56_v36  ;;  %407 = vmatprep.mubr.f32.mxu1 %v64_v37 }
  0x30   :  { %396 = vmatmul.mubr.f32.gmra.mrb[6].mxu0 %v57_v38  ;;  %408 = vmatmul.mubr.f32.gmra.mrb[6].mxu1 %v65_v39 }
  0xf7   :  { %v388_v41 = vpop.f32.mrb[0].mxu0  ;;  %v400_v42 = vpop.f32.mrb[0].mxu1 }
  0xf8   :  { %v286_v43 = vadd.f32 %v388_v41, %v321_v40  ;;  %v294_v44 = vadd.f32 %v400_v42, %v321_v40  ;;  %v148_v45 = vpop.f32.mrb[1].mxu0  ;;  %v188_v46 = vpop.f32.mrb[1].mxu1 }
  0xf9   :  { %v285_v47 = vadd.f32 %v321_v40, %v148_v45  ;;  %v293_v48 = vadd.f32 %v321_v40, %v188_v46 }
  0xfa   :  { %302 = vst [vmem:[%s628_s3 + $0x8] sm:$0xff] %v286_v43  ;;  %310 = vst [vmem:[%s628_s3 + $0x48] sm:$0xff] %v294_v44 }
  0xfb   :  { %301 = vst [vmem:[%s628_s3] sm:$0xff] %v285_v47  ;;  %309 = vst [vmem:[%s628_s3 + $0x40] sm:$0xff] %v293_v48  ;;  %v391_v49 = vpop.f32.mrb[2].mxu0  ;;  %v403_v50 = vpop.f32.mrb[2].mxu1 }
  0xfc   :  { %v288_v51 = vadd.f32 %v391_v49, %v321_v40  ;;  %v296_v52 = vadd.f32 %v403_v50, %v321_v40  ;;  %v158_v53 = vpop.f32.mrb[3].mxu0  ;;  %v198_v54 = vpop.f32.mrb[3].mxu1 }
  0xfd   :  { %v287_v55 = vadd.f32 %v321_v40, %v158_v53  ;;  %v295_v56 = vadd.f32 %v321_v40, %v198_v54 }
  0xfe   :  { %304 = vst [vmem:[%s628_s3 + $0x18] sm:$0xff] %v288_v51  ;;  %312 = vst [vmem:[%s628_s3 + $0x58] sm:$0xff] %v296_v52 }
  0xff   :  { %303 = vst [vmem:[%s628_s3 + $0x10] sm:$0xff] %v287_v55  ;;  %311 = vst [vmem:[%s628_s3 + $0x50] sm:$0xff] %v295_v56  ;;  %v394_v57 = vpop.f32.mrb[4].mxu0  ;;  %v406_v58 = vpop.f32.mrb[4].mxu1 }
 0x100   :  { %v290_v59 = vadd.f32 %v394_v57, %v321_v40  ;;  %v298_v60 = vadd.f32 %v406_v58, %v321_v40  ;;  %v168_v61 = vpop.f32.mrb[5].mxu0  ;;  %v208_v62 = vpop.f32.mrb[5].mxu1 }
 0x101   :  { %v289_v63 = vadd.f32 %v321_v40, %v168_v61  ;;  %v297_v0 = vadd.f32 %v321_v40, %v208_v62 }
 0x102   :  { %306 = vst [vmem:[%s628_s3 + $0x28] sm:$0xff] %v290_v59  ;;  %314 = vst [vmem:[%s628_s3 + $0x68] sm:$0xff] %v298_v60 }
 0x103   :  { %305 = vst [vmem:[%s628_s3 + $0x20] sm:$0xff] %v289_v63  ;;  %313 = vst [vmem:[%s628_s3 + $0x60] sm:$0xff] %v297_v0  ;;  %v397_v1 = vpop.f32.mrb[6].mxu0  ;;  %v409_v2 = vpop.f32.mrb[6].mxu1 }
 0x104   :  { %v292_v3 = vadd.f32 %v397_v1, %v321_v40  ;;  %v300_v4 = vadd.f32 %v409_v2, %v321_v40  ;;  %v178_v5 = vpop.f32.mrb[7].mxu0  ;;  %v218_v6 = vpop.f32.mrb[7].mxu1 }
 0x105   :  { %v291_v7 = vadd.f32 %v321_v40, %v178_v5  ;;  %v299_v8 = vadd.f32 %v321_v40, %v218_v6 }
 0x106   :  { %308 = vst [vmem:[%s628_s3 + $0x38] sm:$0xff] %v292_v3  ;;  %316 = vst [vmem:[%s628_s3 + $0x78] sm:$0xff] %v300_v4 }
 0x107   :  { %307 = vst [vmem:[%s628_s3 + $0x30] sm:$0xff] %v291_v7  ;;  %315 = vst [vmem:[%s628_s3 + $0x70] sm:$0xff] %v299_v8 }

</bundles_post_ra>
